<compile_context>
chip_gen: v6e
topology: v6e:2x2x1
jax: 0.10.0
libtpu: 0.0.40
codegen_flags: <defaults>
</compile_context>

<pallas_src>
import jax
import jax.numpy as jnp
from jax.experimental import pallas as pl
from jax.experimental.pallas import tpu as pltpu

HIDDEN = 64               # nn.Linear(input_size, 64)
_SUBLANE = 8              # f32 sublane granularity for row tiles
_LANE = 128
_SPLIT_MIN_ROWS = 256     # only split a single-tile problem across 2 cores if halves >= 128 rows


def _round_up(x, m):
    return -(-x // m) * m


def _device_caps():
    """(row-tile cap, per-step VMEM tile budget, vmem_limit_bytes) per generation."""
    try:
        kind = jax.devices()[0].device_kind.lower()
    except Exception:
        kind = ""
    if any(t in kind for t in ("v5e", "v5 lite", "v5lite", "v6e", "v6 lite", "v6lite")):
        # 128 MiB physical VMEM: bigger tiles push the per-step overhead below ~4%.
        return 8192, 40 << 20, 48 << 20
    # Conservative default, sized for v7x (64 MiB VMEM / 32 MiB scoped limit).
    return 4096, 22 << 20, 32 << 20


def _encoder_kernel(x_ref, w_ref, b_ref, o_ref):
    # x_ref: (tr, P*K)  w_ref: (P*K, P*64)  b_ref: (1, P*64)  o_ref: (tr, P*64)
    y = jnp.dot(x_ref[...], w_ref[...],
                preferred_element_type=jnp.float32,
                precision=jax.lax.Precision.HIGHEST)
    o_ref[...] = jnp.maximum(y + b_ref[...], 0.0).astype(o_ref.dtype)


def _resident_spec(shape):
    """Grid-invariant operand: request a single buffer (no redundant double-buffer
    or per-step DMA bookkeeping for data that never changes)."""
    idx = lambda i: (0, 0)
    try:
        return pl.BlockSpec(shape, idx, pipeline_mode=pl.Buffered(1))
    except Exception:   # jax version without pipeline_mode on BlockSpec
        return pl.BlockSpec(shape, idx)


def _pick_pack(input_size, m_rows):
    """Rows packed per wide row.  Want P*HIDDEN (output lanes) a multiple of 128
    (unmasked lane-dense stores) and, when cheap, P*input_size >= 128 too; P is
    then lowered until it divides the row count so no activation pad copy and no
    output slice copy is ever needed (for odd row counts P=1 -> masked 64-lane
    stores, still cheaper than a full pad + slice pass)."""
    p = 2
    while p < 8 and p * input_size < _LANE:
        p *= 2
    while p > 1 and m_rows % p != 0:
        p //= 2
    return p


def _pick_row_tile(rows, pk, pn, in_isz, out_isz, caps):
    cap_rows, budget, _ = caps
    # Per-step (double-buffered) footprint: x tile + out tile (+ resident weight/bias).
    fixed = 2 * pk * pn * in_isz + 8192
    per_row = 2 * (pk * in_isz + pn * out_isz)
    # TODO(synk): for very large input_size (weight block near the VMEM budget) add
    # a K grid axis with a VMEM accumulator instead of one resident weight block.
    tr_max = min(cap_rows,
                 max(_SUBLANE, (budget - fixed) // per_row // _SUBLANE * _SUBLANE))
    if rows <= tr_max:
        if rows >= _SPLIT_MIN_ROWS:
            # Split the single tile in two so both v7x TensorCores get work.
            return _round_up(pl.cdiv(rows, 2), _SUBLANE)
        return max(rows, 1)          # exact tile: no row padding, no wasted HBM traffic
    tr = tr_max
    # Keep small grids even: v7x shards the 1-D "parallel" grid over 2 TensorCores,
    # and an odd grid of 3/5/7 leaves one core idle for a whole tile.
    g = pl.cdiv(rows, tr)
    if g % 2 == 1 and 3 <= g <= 7:
        tr = min(tr, _round_up(pl.cdiv(rows, g + 1), _SUBLANE))
    return tr


def net_encoder_forward(data, w_t, b, *, input_size,
                        in_dtype=jnp.float32, out_dtype=jnp.float32,
                        row_tile=None):
    """ReLU(data.float().view(-1, input_size) @ W^T + b).

    data : any shape whose total size is a multiple of input_size.
    w_t  : (input_size, 64) = W.T      b : (64,)
    in_dtype  : matmul input dtype (f32 = PyTorch-exact; bf16 = fast path).
    out_dtype : output dtype; bf16 halves the dominant HBM-write traffic with no
                input-precision loss (recommended when the consumer tolerates it).
    """
    x = data.astype(jnp.float32).reshape(-1, input_size)   # == data.float().view(-1, K)
    M, K = x.shape
    if in_dtype != jnp.float32:
        x = x.astype(in_dtype)

    P = _pick_pack(K, M)
    rows = M // P                      # P divides M -> no pad copy, no output slice
    pk, pn = P * K, P * HIDDEN
    in_isz = jnp.dtype(in_dtype).itemsize
    out_isz = jnp.dtype(out_dtype).itemsize

    caps = _device_caps()
    tr = row_tile if row_tile is not None else _pick_row_tile(
        rows, pk, pn, in_isz, out_isz, caps)
    grid = pl.cdiv(rows, tr)           # partial last block: OOB stores are masked by Pallas

    x_wide = x.reshape(rows, pk)       # metadata-only: P consecutive rows -> 1 wide row
    # Block-diagonal kron(I_P, W^T): the extra products are exact zeros, so the wide
    # matmul equals the plain (M,K)@(K,64) matmul.  Bias is added in f32.
    w_wide = jnp.kron(jnp.eye(P, dtype=in_dtype), w_t.astype(in_dtype))
    b_wide = jnp.tile(b.astype(jnp.float32).reshape(1, HIDDEN), (1, P))

    out_wide = pl.pallas_call(
        _encoder_kernel,
        out_shape=jax.ShapeDtypeStruct((rows, pn), out_dtype),
        grid_spec=pltpu.PrefetchScalarGridSpec(
            num_scalar_prefetch=0,
            grid=(grid,),
            in_specs=[
                pl.BlockSpec((tr, pk), lambda i: (i, 0)),   # activation row tile
                _resident_spec((pk, pn)),                   # weight (grid-invariant)
                _resident_spec((1, pn)),                    # bias   (grid-invariant)
            ],
            out_specs=pl.BlockSpec((tr, pn), lambda i: (i, 0)),
        ),
        compiler_params=pltpu.CompilerParams(
            dimension_semantics=("parallel",),
            vmem_limit_bytes=caps[2],
        ),
        cost_estimate=pl.CostEstimate(
            flops=2 * rows * pk * pn,
            transcendentals=0,
            bytes_accessed=(rows * pk * in_isz          # activations in
                            + pk * pn * in_isz          # weight in
                            + pn * 4                    # bias in
                            + rows * pn * out_isz),     # output out
        ),
    )(x_wide, w_wide, b_wide)

    # (rows, P*64) row-major is the same memory as (M, 64): metadata-only reshape,
    # no [:M] slice, no padded rows to strip.
    return out_wide.reshape(M, HIDDEN)


if __name__ == "__main__":
    key = jax.random.PRNGKey(0)
    k_data, k_w, k_b = jax.random.split(key, 3)

    input_size = 32
    batch = 16
    data = jax.random.normal(k_data, (batch, input_size), jnp.float32)

    # Deterministic init mimicking torch.nn.Linear defaults: U(-1/sqrt(in), 1/sqrt(in)).
    bound = 1.0 / jnp.sqrt(jnp.float32(input_size))
    w = jax.random.uniform(k_w, (HIDDEN, input_size), jnp.float32, -bound, bound)
    b = jax.random.uniform(k_b, (HIDDEN,), jnp.float32, -bound, bound)

    # Pure-JAX reference (same math as the PyTorch module), pinned to full precision.
    ref = jnp.maximum(
        jnp.dot(data.reshape(-1, input_size), w.T,
                precision=jax.lax.Precision.HIGHEST) + b, 0.0)

    # Exact-semantics path: f32 in / f32 out.
    out = jax.block_until_ready(
        net_encoder_forward(data, w.T, b, input_size=input_size))
    assert out.shape == (batch, HIDDEN), out.shape
    assert jnp.allclose(out, ref, atol=1e-4, rtol=1e-4), \
        float(jnp.max(jnp.abs(out - ref)))

    # Fast path: f32 inputs, bf16 output (halves the dominant HBM-write traffic).
    out_bf16 = jax.block_until_ready(
        net_encoder_forward(data, w.T, b, input_size=input_size,
                            out_dtype=jnp.bfloat16))
    assert out_bf16.dtype == jnp.bfloat16 and out_bf16.shape == (batch, HIDDEN)
    assert jnp.allclose(out_bf16.astype(jnp.float32), ref, atol=5e-2, rtol=5e-2)

    print("KERNEL_OK")
</pallas_src>

<mosaic_0001>
module attributes {stable_mosaic.version = 11 : i64} {
  func.func @_encoder_kernel(%arg0: i32, %arg1: memref<4x128xf32, #tpu.memory_space<vmem>>, %arg2: memref<128x256xf32, #tpu.memory_space<vmem>>, %arg3: memref<1x256xf32, #tpu.memory_space<vmem>>, %arg4: memref<4x256xf32, #tpu.memory_space<vmem>>) attributes {dimension_semantics = [#tpu.dimension_semantics<parallel>], iteration_bounds = array<i64: 1>, scalar_prefetch = 0 : i64, scratch_operands = 0 : i64, tpu.core_type = #tpu.core_type<tc>, window_params = [{transform_indices = @transform_0, window_bounds = array<i64: 4, 128>}, {pipeline_mode = #tpu.pipeline_mode<synchronous>, transform_indices = @transform_1, window_bounds = array<i64: 128, 256>}, {pipeline_mode = #tpu.pipeline_mode<synchronous>, transform_indices = @transform_2, window_bounds = array<i64: 1, 256>}, {transform_indices = @transform_3, window_bounds = array<i64: 4, 256>}]} {
    %c0 = arith.constant 0 : index
    %c0_0 = arith.constant 0 : index
    %0 = vector.load %arg1[%c0, %c0_0] : memref<4x128xf32, #tpu.memory_space<vmem>>, vector<4x128xf32>
    %c0_1 = arith.constant 0 : index
    %c0_2 = arith.constant 0 : index
    %1 = vector.load %arg2[%c0_1, %c0_2] : memref<128x256xf32, #tpu.memory_space<vmem>>, vector<128x256xf32>
    %cst = arith.constant dense<0.000000e+00> : vector<4x256xf32>
    %2 = tpu.matmul %0, %1, %cst {dimension_numbers = #tpu.dot_dimension_numbers<[1], [0], [0], [1], [0, 0, 1, 1], [], []>, precision = #tpu.contract_precision<fp32>} : vector<4x128xf32>, vector<128x256xf32>, vector<4x256xf32> -> vector<4x256xf32>
    %c0_3 = arith.constant 0 : index
    %c0_4 = arith.constant 0 : index
    %3 = vector.load %arg3[%c0_3, %c0_4] : memref<1x256xf32, #tpu.memory_space<vmem>>, vector<1x256xf32>
    %4 = vector.broadcast %3 : vector<1x256xf32> to vector<4x256xf32>
    %5 = arith.addf %2, %4 : vector<4x256xf32>
    %cst_5 = arith.constant 0.000000e+00 : f32
    %6 = vector.broadcast %cst_5 : f32 to vector<4x256xf32>
    %7 = arith.maximumf %5, %6 : vector<4x256xf32>
    %c0_6 = arith.constant 0 : index
    %c0_7 = arith.constant 0 : index
    %8 = vector.load %arg4[%c0_6, %c0_7] : memref<4x256xf32, #tpu.memory_space<vmem>>, vector<4x256xf32>
    tpu.vector_store %arg4[%c0_6, %c0_7], %7 {strides = array<i32>} : memref<4x256xf32, #tpu.memory_space<vmem>>, vector<4x256xf32>,
    return
  }
  func.func @transform_0(%arg0: i32) -> (i32, i32) {
    %c0_i32 = arith.constant 0 : i32
    %c0_i32_0 = arith.constant 0 : i32
    return %arg0, %c0_i32 : i32, i32
  }
  func.func @transform_1(%arg0: i32) -> (i32, i32) {
    %c0_i32 = arith.constant 0 : i32
    %c0_i32_0 = arith.constant 0 : i32
    %c0_i32_1 = arith.constant 0 : i32
    return %c0_i32, %c0_i32_0 : i32, i32
  }
  func.func @transform_2(%arg0: i32) -> (i32, i32) {
    %c0_i32 = arith.constant 0 : i32
    %c0_i32_0 = arith.constant 0 : i32
    %c0_i32_1 = arith.constant 0 : i32
    return %c0_i32, %c0_i32_0 : i32, i32
  }
  func.func @transform_3(%arg0: i32) -> (i32, i32) {
    %c0_i32 = arith.constant 0 : i32
    %c0_i32_0 = arith.constant 0 : i32
    return %arg0, %c0_i32 : i32, i32
  }
}

</mosaic_0001>

<bundles_post_ra>
// kernel: tpu_custom_call.1
= control target key start
LH: loop header
LB: loop body
LE: loop exit
PB: predicated region body
PF: predicated region fallthrough
CT: control target
= control target key end

     0   :  { %8 = vsyncpa [#allocation3], 0  ;;  %s1667_s0 = inlined_call_operand.hbm [shape: f32[4,128], index: 0, kind: input, shape index: {}]   ;;  %s1668_s1 = inlined_call_operand.hbm [shape: f32[128,256], index: 1, kind: input, shape index: {}]   ;;  %s1669_s2 = inlined_call_operand.vmem [shape: f32[1,256], index: 2, kind: input, shape index: {}]   ;;  %s1670_s3 = inlined_call_operand.hbm [shape: f32[4,256], index: 3, kind: output, shape index: {}]  }
   0x1   :  { %9 = vsyncpa [#allocation6], 0 }
   0x2   :  { %10 = vsyncpa [#allocation4], 0  ;;  %s1036_s12 = smov [#allocation2]   ;;  %s1037_s14 = smov [#allocation5]  }
   0x3   :  { %s17_s13 = sshll.u32 %s1036_s12, 4  ;;  %s26_s15 = sshll.u32 %s1037_s14, 4  ;;  %s18_s13 = int_to_ptr.vmem [resolvable:$true] %s17_s13  ;;  %s27_s15 = int_to_ptr.vmem [resolvable:$true] %s26_s15 }
   0x4   :  { %s978_s16 = scalar_lea.vmem %s18_s13, 64  ;;  %p983_p1 = scmp.lt.s32.totalorder %s18_s13, %s18_s13 }
   0x5   :  { %p979_p0 = scmp.ne.s32.totalorder %s18_s13, %s978_s16  ;;  %p984_p2 = scmp.lt.s32.totalorder %s978_s16, %s978_s16 }
   0x7   :  { %p985_p3 = por %p984_p2, %p983_p1 }
   0x9   :  { %p986_p4 = pnand %p985_p3, %p979_p0 }
   0xb   :  { %989 = shalt.err (!%p986_p4)
}
   0xc   :  { %20 = dma.hbm_to_vmem [thread:$0]  %s1667_s0, 64, %s18_s13, [#allocation3]  }
   0xd   :  { %s998_s19 = scalar_lea.vmem %s27_s15, 4096  ;;  %p1003_p6 = scmp.lt.s32.totalorder %s27_s15, %s27_s15 }
   0xe   :  { %p999_p5 = scmp.ne.s32.totalorder %s27_s15, %s998_s19  ;;  %p1004_p7 = scmp.lt.s32.totalorder %s998_s19, %s998_s19 }
  0x10   :  { %p1005_p8 = por %p1004_p7, %p1003_p6 }
  0x12   :  { %p1006_p9 = pnand %p1005_p8, %p999_p5 }
  0x14   :  { %1009 = shalt.err (!%p1006_p9)
}
  0x15   :  { %s1038_s20 = smov 256   ;;  %s1039_s21 = smov 16  }
  0x16   :  { %32 = dma.hbm_to_vmem [thread:$0]  %s1668_s1, 4096, %s27_s15, [#allocation6], %s1038_s20, %s1038_s20, %s1039_s21  }
  0x17   :  { %1030 = dma.done.wait [#allocation3], 64  }
  0x18   :  { %1031 = vsyncadd [#allocation3], 4294967232 }
  0x19   :  { %1032 = dma.done.wait [#allocation6], 4096  }
  0x1a   :  { %1033 = vsyncadd [#allocation6], 4294963200  ;;  %v1685_v0 = vmov 0.0   ;;  %v73_v1 = vld [vmem:[#allocation5 + $0xf8] sm:$0xff]  ;;  %v72_v2 = vld [vmem:[#allocation5 + $0xf0] sm:$0xff] }
  0x1b   :  { %182 = vmatprep.mubr.f32.mxu0 %v1685_v0  ;;  %418 = vmatprep.mubr.f32.mxu1 %v1685_v0  ;;  %v71_v3 = vld [vmem:[#allocation5 + $0xe8] sm:$0xff]  ;;  %v1070_v4 = vand.u32 4294901760, %v73_v1  ;;  %v1072_v5 = vand.u32 4294901760, %v72_v2  ;;  %v70_v7 = vld [vmem:[#allocation5 + $0xe0] sm:$0xff]  ;;  %v69_v8 = vld [vmem:[#allocation5 + $0xd8] sm:$0xff] }
  0x1c   :  { %v1074_v6 = vand.u32 4294901760, %v71_v3  ;;  %v68_v9 = vld [vmem:[#allocation5 + $0xd0] sm:$0xff]  ;;  %v1076_v10 = vand.u32 4294901760, %v70_v7  ;;  %v1078_v11 = vand.u32 4294901760, %v69_v8  ;;  %v67_v13 = vld [vmem:[#allocation5 + $0xc8] sm:$0xff]  ;;  %v66_v14 = vld [vmem:[#allocation5 + $0xc0] sm:$0xff] }
  0x1d   :  { %v1080_v12 = vand.u32 4294901760, %v68_v9  ;;  %v65_v15 = vld [vmem:[#allocation5 + $0xb8] sm:$0xff]  ;;  %87 = vmatprep.subr.mxu0 %v1070_v4  ;;  %v1083_v16 = vand.u32 4294901760, %v67_v13  ;;  %v1085_v17 = vand.u32 4294901760, %v66_v14  ;;  %v1090_v19 = vsub.f32 %v73_v1, %v1070_v4  ;;  %v1092_v20 = vld [vmem:[#allocation5 + $0xb0] sm:$0xff]  ;;  %v1094_v21 = vld [vmem:[#allocation5 + $0xa8] sm:$0xff] }
  0x1e   :  { %v1087_v18 = vand.u32 4294901760, %v65_v15  ;;  %v1096_v22 = vld [vmem:[#allocation5 + $0xa0] sm:$0xff]  ;;  %89 = vmatpush1.msra.mxu0 %v1072_v5  ;;  %v1100_v23 = vand.u32 4294901760, %v1092_v20  ;;  %v1103_v24 = vsub.f32 %v72_v2, %v1072_v5  ;;  %v1106_v25 = vand.u32 4294901760, %v1094_v21  ;;  %v1111_v27 = vld [vmem:[#allocation5 + $0x98] sm:$0xff]  ;;  %v1113_v28 = vld [vmem:[#allocation5 + $0x90] sm:$0xff] }
  0x1f   :  { %v1109_v26 = vsub.f32 %v71_v3, %v1074_v6  ;;  %v1115_v29 = vld [vmem:[#allocation5 + $0x88] sm:$0xff]  ;;  %91 = vmatprep.subr.mxu0 %v1074_v6  ;;  %v1683_v30 = vand.u32 4294901760, %v1090_v19  ;;  %v1120_v31 = vand.u32 4294901760, %v1096_v22  ;;  %v1123_v32 = vsub.f32 %v70_v7, %v1076_v10  ;;  %v1137_v38 = vld [vmem:[#allocation5 + $0x80] sm:$0xff]  ;;  %v1161_v47 = vld [vmem:[#allocation5 + $0x78] sm:$0xff] }
  0x20   :  { %v1126_v33 = vand.u32 4294901760, %v1111_v27  ;;  %93 = vmatpush1.msra.mxu0 %v1076_v10  ;;  %v1682_v34 = vand.u32 4294901760, %v1103_v24  ;;  %v1132_v36 = vsub.f32 %v69_v8, %v1078_v11  ;;  %v1135_v37 = vand.u32 4294901760, %v1113_v28  ;;  %v1171_v52 = vld [vmem:[#allocation5 + $0x70] sm:$0xff]  ;;  %v1178_v57 = vld [vmem:[#allocation5 + $0x68] sm:$0xff]  ;;  %v1190_v62 = vld [vmem:[#allocation5 + $0x60] sm:$0xff] }
  0x21   :  { %1736 = vst [vmem:[#allocation11_spill] sm:$0xff] %v1120_v31  ;;  %v1680_v35 = vand.u32 4294901760, %v1109_v26  ;;  %95 = vmatprep.subr.mxu0 %v1078_v11  ;;  %v197_v39 = vsub.f32 %v1090_v19, %v1683_v30  ;;  %v1678_v40 = vand.u32 4294901760, %v1123_v32  ;;  %v1145_v41 = vsub.f32 %v68_v9, %v1080_v12  ;;  %v1202_v7 = vld [vmem:[#allocation5 + $0x58] sm:$0xff] }
  0x22   :  { %1737 = vst [vmem:[#allocation12_spill] sm:$0xff] %v1126_v33  ;;  %1738 = vst [vmem:[#allocation13_spill] sm:$0xff] %v1135_v37  ;;  %v1148_v42 = vand.u32 4294901760, %v1115_v29  ;;  %97 = vmatpush1.msra.mxu0 %v1080_v12  ;;  %v203_v43 = vsub.f32 %v1103_v24, %v1682_v34  ;;  %v1677_v45 = vand.u32 4294901760, %v1132_v36  ;;  %v1159_v46 = vsub.f32 %v67_v13, %v1083_v16  ;;  %v1303_v34 = vld [vmem:[#allocation5 + $0x20] sm:$0xff] }
  0x23   :  { %v209_v44 = vsub.f32 %v1109_v26, %v1680_v35  ;;  %99 = vmatprep.subr.mxu0 %v1083_v16  ;;  %v198_v48 = vand.u32 4294901760, %v197_v39  ;;  %v215_v49 = vsub.f32 %v1123_v32, %v1678_v40  ;;  %v1675_v50 = vand.u32 4294901760, %v1145_v41  ;;  %v1293_v35 = vld [vmem:[#allocation5 + $0x28] sm:$0xff] }
  0x24   :  { %1739 = vst [vmem:[#allocation14_spill] sm:$0xff] %v1148_v42  ;;  %v1169_v51 = vand.u32 4294901760, %v1137_v38  ;;  %101 = vmatpush1.msra.mxu0 %v1085_v17  ;;  %v204_v53 = vand.u32 4294901760, %v203_v43  ;;  %v221_v55 = vsub.f32 %v1132_v36, %v1677_v45  ;;  %v1673_v56 = vand.u32 4294901760, %v1159_v46  ;;  %v1280_v45 = vld [vmem:[#allocation5 + $0x30] sm:$0xff] }
  0x25   :  { %v210_v54 = vand.u32 4294901760, %v209_v44  ;;  %103 = vmatprep.subr.mxu0 %v1087_v18  ;;  %199 = vmatprep.subr.mxu1 %v198_v48  ;;  %v216_v58 = vand.u32 4294901760, %v215_v49  ;;  %v227_v59 = vsub.f32 %v1145_v41, %v1675_v50  ;;  %v1185_v60 = vsub.f32 %v66_v14, %v1085_v17 }
  0x26   :  { %1740 = vst [vmem:[#allocation15_spill] sm:$0xff] %v1169_v51  ;;  %v1188_v61 = vand.u32 4294901760, %v1161_v47  ;;  %105 = vmatpush1.msra.mxu0 %v1100_v23  ;;  %205 = vmatpush1.msra.mxu1 %v204_v53  ;;  %v222_v63 = vand.u32 4294901760, %v221_v55  ;;  %v233_v1 = vsub.f32 %v1159_v46, %v1673_v56  ;;  %v1197_v2 = vsub.f32 %v65_v15, %v1087_v18  ;;  %v1213_v15 = vld [vmem:[#allocation5 + $0x50] sm:$0xff] }
  0x27   :  { %v1200_v3 = vand.u32 4294901760, %v1171_v52  ;;  %107 = vmatprep.subr.mxu0 %v1106_v25  ;;  %211 = vmatprep.subr.mxu1 %v210_v54  ;;  %v228_v8 = vand.u32 4294901760, %v227_v59  ;;  %v1672_v9 = vand.u32 4294901760, %v1185_v60  ;;  %v1208_v13 = vsub.f32 %v1092_v20, %v1100_v23 }
  0x28   :  { %1741 = vst [vmem:[#allocation16_spill] sm:$0xff] %v1188_v61  ;;  %v1211_v14 = vand.u32 4294901760, %v1178_v57  ;;  %109 = vmatpush1.msra.mxu0 %v1120_v31  ;;  %217 = vmatpush1.msra.mxu1 %v216_v58  ;;  %v234_v39 = vand.u32 4294901760, %v233_v1  ;;  %v1671_v43 = vand.u32 4294901760, %v1197_v2  ;;  %v1219_v44 = vsub.f32 %v1094_v21, %v1106_v25  ;;  %v1236_v21 = vld [vmem:[#allocation5 + $0x48] sm:$0xff] }
  0x29   :  { %1742 = vst [vmem:[#allocation17_spill] sm:$0xff] %v1200_v3  ;;  %v1222_v48 = vand.u32 4294901760, %v1190_v62  ;;  %111 = vmatprep.subr.mxu0 %v1126_v33  ;;  %223 = vmatprep.subr.mxu1 %v222_v63  ;;  %v239_v20 = vsub.f32 %v1185_v60, %v1672_v9  ;;  %v1674_v49 = vand.u32 4294901760, %v1208_v13  ;;  %v1231_v53 = vsub.f32 %v1096_v22, %v1120_v31  ;;  %v1259_v9 = vld [vmem:[#allocation5 + $0x40] sm:$0xff] }
  0x2a   :  { %1743 = vst [vmem:[#allocation18_spill] sm:$0xff] %v1211_v14  ;;  %v1234_v54 = vand.u32 4294901760, %v1202_v7  ;;  %113 = vmatpush1.msra.mxu0 %v1135_v37  ;;  %229 = vmatpush1.msra.mxu1 %v228_v8  ;;  %v245_v55 = vsub.f32 %v1197_v2, %v1671_v43  ;;  %v1676_v58 = vand.u32 4294901760, %v1219_v44  ;;  %v1245_v59 = vsub.f32 %v1111_v27, %v1126_v33  ;;  %v41_v33 = vld [vmem:[#allocation2] sm:$0xf] }
  0x2b   :  { %1744 = vst [vmem:[#allocation19_spill] sm:$0xff] %v1222_v48  ;;  %v1248_v22 = vand.u32 4294901760, %v1213_v15  ;;  %115 = vmatprep.subr.mxu0 %v1148_v42  ;;  %235 = vmatprep.subr.mxu1 %v234_v39  ;;  %v240_v63 = vand.u32 4294901760, %v239_v20  ;;  %v251_v1 = vsub.f32 %v1208_v13, %v1674_v49  ;;  %v1679_v8 = vand.u32 4294901760, %v1231_v53  ;;  %v1269_v49 = vld [vmem:[#allocation5 + $0x38] sm:$0xff] }
  0x2c   :  { %1745 = vst [vmem:[#allocation20_spill] sm:$0xff] %v1234_v54  ;;  %v1257_v43 = vsub.f32 %v1113_v28, %v1135_v37  ;;  %117 = vmatpush1.msra.mxu0 %v1169_v51  ;;  %v246_v27 = vand.u32 4294901760, %v245_v55  ;;  %v257_v39 = vsub.f32 %v1219_v44, %v1676_v58  ;;  %v1681_v20 = vand.u32 4294901760, %v1245_v59 }
  0x2d   :  { %1746 = vst [vmem:[#allocation21_spill] sm:$0xff] %v1248_v22  ;;  %v1267_v56 = vand.u32 4294901760, %v1236_v21  ;;  %241 = vmatpush1.msra.mxu1 %v240_v63  ;;  %119 = vmatprep.subr.mxu0 %v1188_v61  ;;  %v252_v28 = vand.u32 4294901760, %v251_v1  ;;  %v263_v50 = vsub.f32 %v1231_v53, %v1679_v8  ;;  %v1278_v58 = vsub.f32 %v1115_v29, %v1148_v42 }
  0x2e   :  { %v1684_v55 = vand.u32 4294901760, %v1257_v43  ;;  %247 = vmatprep.subr.mxu1 %v246_v27  ;;  %121 = vmatpush1.msra.mxu0 %v1200_v3  ;;  %v258_v40 = vand.u32 4294901760, %v257_v39  ;;  %v269_v63 = vsub.f32 %v1245_v59, %v1681_v20  ;;  %v1287_v1 = vand.u32 4294901760, %v1259_v9 }
  0x2f   :  { %1747 = vst [vmem:[#allocation22_spill] sm:$0xff] %v1267_v56  ;;  %v1291_v8 = vsub.f32 %v1137_v38, %v1169_v51  ;;  %253 = vmatpush1.msra.mxu1 %v252_v28  ;;  %123 = vmatprep.subr.mxu0 %v1211_v14  ;;  %v264_v29 = vand.u32 4294901760, %v263_v50  ;;  %v1689_v39 = vand.u32 4294901760, %v1278_v58  ;;  %v1301_v20 = vand.u32 4294901760, %v1269_v49 }
  0x30   :  { %1748 = vst [vmem:[#allocation23_spill] sm:$0xff] %v1287_v1  ;;  %v275_v27 = vsub.f32 %v1257_v43, %v1684_v55  ;;  %259 = vmatprep.subr.mxu1 %v258_v40  ;;  %125 = vmatpush1.msra.mxu0 %v1222_v48  ;;  %v270_v38 = vand.u32 4294901760, %v269_v63  ;;  %v1309_v50 = vsub.f32 %v1161_v47, %v1188_v61  ;;  %v1312_v30 = vand.u32 4294901760, %v1280_v45  ;;  %v1314_v55 = vld [vmem:[#allocation5 + $0x18] sm:$0xff] }
  0x31   :  { %v1692_v28 = vand.u32 4294901760, %v1291_v8  ;;  %265 = vmatpush1.msra.mxu1 %v264_v29  ;;  %127 = vmatprep.subr.mxu0 %v1234_v54  ;;  %v281_v40 = vsub.f32 %v1278_v58, %v1689_v39  ;;  %v1322_v63 = vsub.f32 %v1171_v52, %v1200_v3  ;;  %v1325_v47 = vand.u32 4294901760, %v1293_v35  ;;  %v1339_v52 = vld [vmem:[#allocation5 + $0x10] sm:$0xff] }
  0x32   :  { %1749 = vst [vmem:[#allocation24_spill] sm:$0xff] %v1312_v30  ;;  %v276_v0 = vand.u32 4294901760, %v275_v27  ;;  %271 = vmatprep.subr.mxu1 %v270_v38  ;;  %129 = vmatpush1.msra.mxu0 %v1248_v22  ;;  %v1334_v61 = vsub.f32 %v1178_v57, %v1211_v14  ;;  %v1337_v39 = vand.u32 4294901760, %v1303_v34  ;;  %v1348_v27 = vand.u32 4294901760, %v1314_v55  ;;  %v1350_v57 = vld [vmem:[#allocation5 + $0x8] sm:$0xff] }
  0x33   :  { %1750 = vst [vmem:[#allocation25_spill] sm:$0xff] %v1325_v47  ;;  %v287_v29 = vsub.f32 %v1291_v8, %v1692_v28  ;;  %131 = vmatprep.subr.mxu0 %v1267_v56  ;;  %v282_v38 = vand.u32 4294901760, %v281_v40  ;;  %v1345_v28 = vsub.f32 %v1190_v62, %v1222_v48  ;;  %v1752_v51 = vand.u32 4294901760, %v1309_v50  ;;  %v1373_v40 = vld [vmem:[#allocation5] sm:$0xff] }
  0x34   :  { %1751 = vst [vmem:[#allocation26_spill] sm:$0xff] %v1337_v39  ;;  %277 = vmatpush1.msra.mxu1 %v276_v0  ;;  %133 = vmatpush1.msra.mxu0 %v1287_v1  ;;  %v1359_v3 = vsub.f32 %v1202_v7, %v1234_v54  ;;  %v1753_v62 = vand.u32 4294901760, %v1322_v63  ;;  %v1381_v42 = vand.u32 4294901760, %v1350_v57  ;;  %v1397_v31 = vand.u32 4294901760, %v1373_v40 }
  0x35   :  { %v288_v14 = vand.u32 4294901760, %v287_v29  ;;  %v293_v0 = vsub.f32 %v1309_v50, %v1752_v51  ;;  %283 = vmatprep.subr.mxu1 %v282_v38  ;;  %135 = vmatprep.subr.mxu0 %v1301_v20  ;;  %v1367_v29 = vand.u32 4294901760, %v1339_v52  ;;  %v1371_v51 = vsub.f32 %v1213_v15, %v1248_v22 }
  0x36   :  { %v299_v48 = vsub.f32 %v1322_v63, %v1753_v62  ;;  %137 = vmatpush1.msra.mxu0 %v1312_v30  ;;  %v1755_v38 = vand.u32 4294901760, %v1334_v61  ;;  %v1711_v62 = vand.u32 4294901760, %v1359_v3  ;;  %v1756_v15 = vand.u32 4294901760, %v1345_v28 }
  0x37   :  { %1754 = vst [vmem:[#allocation27_spill] sm:$0xff] %v1367_v29  ;;  %289 = vmatpush1.msra.mxu1 %v288_v14  ;;  %v294_v7 = vand.u32 4294901760, %v293_v0  ;;  %139 = vmatprep.subr.mxu0 %v1325_v47  ;;  %v1390_v0 = vsub.f32 %v1236_v21, %v1267_v56  ;;  %v1757_v21 = vand.u32 4294901760, %v1371_v51 }
  0x38   :  { %v305_v54 = vsub.f32 %v1334_v61, %v1755_v38  ;;  %v300_v37 = vand.u32 4294901760, %v299_v48  ;;  %v311_v22 = vsub.f32 %v1345_v28, %v1756_v15  ;;  %141 = vmatpush1.msra.mxu0 %v1337_v39  ;;  %v317_v48 = vsub.f32 %v1359_v3, %v1711_v62 }
  0x39   :  { %295 = vmatprep.subr.mxu1 %v294_v7  ;;  %v1401_v15 = vsub.f32 %v1259_v9, %v1287_v1  ;;  %143 = vmatprep.subr.mxu0 %v1348_v27  ;;  %v1714_v7 = vand.u32 4294901760, %v1390_v0  ;;  %v1410_v62 = vsub.f32 %v1269_v49, %v1301_v20 }
  0x3a   :  { %v306_v38 = vand.u32 4294901760, %v305_v54  ;;  %301 = vmatpush1.msra.mxu1 %v300_v37  ;;  %v312_v14 = vand.u32 4294901760, %v311_v22  ;;  %v323_v54 = vsub.f32 %v1371_v51, %v1757_v21  ;;  %v318_v56 = vand.u32 4294901760, %v317_v48  ;;  %145 = vmatpush1.msra.mxu0 %v1367_v29 }
  0x3b   :  { %v1717_v9 = vand.u32 4294901760, %v1401_v15  ;;  %v1414_v37 = vand.u32 4294901760, %v41_v33  ;;  %v1418_v22 = vsub.f32 %v1280_v45, %v1312_v30  ;;  %147 = vmatprep.subr.mxu0 %v1381_v42  ;;  %v329_v49 = vsub.f32 %v1390_v0, %v1714_v7 }
  0x3c   :  { %307 = vmatprep.subr.mxu1 %v306_v38  ;;  %v324_v21 = vand.u32 4294901760, %v323_v54  ;;  %v1427_v48 = vsub.f32 %v1293_v35, %v1325_v47  ;;  %149 = vmatpush1.msra.mxu0 %v1397_v31  ;;  %v1439_v7 = vsub.f32 %v1303_v34, %v1337_v39  ;;  %v1759_v35 = vand.u32 4294901760, %v1410_v62 }
  0x3d   :  { %1758 = vst [vmem:[#allocation28_spill] sm:$0xff] %v1414_v37  ;;  %313 = vmatpush1.msra.mxu1 %v312_v14  ;;  %v335_v45 = vsub.f32 %v1401_v15, %v1717_v9  ;;  %v1434_v14 = vsub.f32 %v41_v33, %v1414_v37  ;;  %v330_v38 = vand.u32 4294901760, %v329_v49  ;;  %428 = vmatprep.subr.mxu0 %v1090_v19  ;;  %v1760_v34 = vand.u32 4294901760, %v1418_v22 }
  0x3e   :  { %319 = vmatprep.subr.mxu1 %v318_v56  ;;  %v341_v56 = vsub.f32 %v1410_v62, %v1759_v35  ;;  %v1722_v47 = vand.u32 4294901760, %v1427_v48  ;;  %v1448_v33 = vsub.f32 %v1314_v55, %v1348_v27  ;;  %v1726_v49 = vand.u32 4294901760, %v1439_v7 }
  0x3f   :  { %325 = vmatpush1.msra.mxu1 %v324_v21  ;;  %v336_v9 = vand.u32 4294901760, %v335_v45  ;;  %v1723_v54 = vand.u32 4294901760, %v1434_v14  ;;  %v347_v21 = vsub.f32 %v1418_v22, %v1760_v34  ;;  %v1461_v55 = vsub.f32 %v1339_v52, %v1367_v29 }
  0x40   :  { %331 = vmatprep.subr.mxu1 %v330_v38  ;;  %v342_v39 = vand.u32 4294901760, %v341_v56  ;;  %v353_v35 = vsub.f32 %v1427_v48, %v1722_v47  ;;  %v1730_v30 = vand.u32 4294901760, %v1448_v33  ;;  %v359_v38 = vsub.f32 %v1439_v7, %v1726_v49 }
  0x41   :  { %1761 = vst [vmem:[#allocation29_spill] sm:$0xff] %v1461_v55  ;;  %337 = vmatpush1.msra.mxu1 %v336_v9  ;;  %v186_v45 = vsub.f32 %v1434_v14, %v1723_v54  ;;  %v348_v34 = vand.u32 4294901760, %v347_v21  ;;  %v1471_v56 = vsub.f32 %v1350_v57, %v1381_v42  ;;  %v1729_v9 = vand.u32 4294901760, %v1461_v55 }
  0x42   :  { %343 = vmatprep.subr.mxu1 %v342_v39  ;;  %v354_v47 = vand.u32 4294901760, %v353_v35  ;;  %v365_v52 = vsub.f32 %v1448_v33, %v1730_v30  ;;  %v1479_v54 = vsub.f32 %v1373_v40, %v1397_v31  ;;  %v360_v29 = vand.u32 4294901760, %v359_v38 }
  0x43   :  { %v187_v21 = vand.u32 4294901760, %v186_v45  ;;  %349 = vmatpush1.msra.mxu1 %v348_v34  ;;  %v1728_v49 = vand.u32 4294901760, %v1471_v56  ;;  %v371_v39 = vsub.f32 %v1461_v55, %v1729_v9  ;;  %v1763_v38 = vmov 0.0   ;;  %v1775_v9 = vld [vmem:[#allocation22_spill] sm:$0xff] }
  0x44   :  { %1762 = vst [vmem:[#allocation30_spill] sm:$0xff] %v1479_v54  ;;  %355 = vmatprep.subr.mxu1 %v354_v47  ;;  %v366_v57 = vand.u32 4294901760, %v365_v52  ;;  %v1727_v35 = vand.u32 4294901760, %v1479_v54  ;;  %v1764_v52 = vld [vmem:[#allocation11_spill] sm:$0xff]  ;;  %v1776_v30 = vand.u32 4294901760, %v1090_v19  ;;  %v1783_v19 = vand.u32 4294901760, %v1132_v36 }
  0x45   :  { %188 = vmatmul.mubr.f32.vlgmr.msra.gmra.mxu0 %v187_v21  ;;  %361 = vmatpush1.msra.mxu1 %v360_v29  ;;  %v377_v40 = vsub.f32 %v1471_v56, %v1728_v49  ;;  %v372_v45 = vand.u32 4294901760, %v371_v39  ;;  %v1765_v21 = vld [vmem:[#allocation12_spill] sm:$0xff]  ;;  %v1767_v39 = vld [vmem:[#allocation14_spill] sm:$0xff]  ;;  %v1774_v49 = vld [vmem:[#allocation21_spill] sm:$0xff] }
  0x46   :  { %431 = vmatpush1.msra.mxu0 %v1103_v24  ;;  %367 = vmatprep.subr.mxu1 %v366_v57  ;;  %v383_v47 = vsub.f32 %v1479_v54, %v1727_v35  ;;  %v1766_v57 = vld [vmem:[#allocation13_spill] sm:$0xff]  ;;  %v1773_v35 = vld [vmem:[#allocation20_spill] sm:$0xff] }
  0x47   :  { %434 = vmatprep.subr.mxu0 %v1109_v26  ;;  %v378_v34 = vand.u32 4294901760, %v377_v40  ;;  %554 = vmatprep.mubr.f32.mxu0 %v1763_v38  ;;  %v1768_v40 = vld [vmem:[#allocation15_spill] sm:$0xff] }
  0x48   :  { %437 = vmatpush1.msra.mxu0 %v1123_v32  ;;  %373 = vmatpush1.msra.mxu1 %v372_v45  ;;  %v384_v29 = vand.u32 4294901760, %v383_v47  ;;  %v1769_v45 = vld [vmem:[#allocation16_spill] sm:$0xff]  ;;  %v1770_v47 = vld [vmem:[#allocation17_spill] sm:$0xff] }
  0x49   :  { %440 = vmatprep.subr.mxu0 %v1132_v36  ;;  %379 = vmatprep.subr.mxu1 %v378_v34  ;;  %v1771_v34 = vld [vmem:[#allocation18_spill] sm:$0xff]  ;;  %v1788_v36 = vand.u32 4294901760, %v1434_v14 }
  0x4a   :  { %443 = vmatpush1.msra.mxu0 %v1145_v41  ;;  %385 = vmatpush1.msra.mxu1 %v384_v29  ;;  %v1772_v29 = vld [vmem:[#allocation19_spill] sm:$0xff] }
  0x4b   :  { %446 = vmatprep.subr.mxu0 %v1159_v46  ;;  %420 = vmatmul.mubr.f32.vlgmr.msra.gmra.mxu1 %v1414_v37  ;;  %v1777_v37 = vld [vmem:[#allocation24_spill] sm:$0xff] }
  0x4c   :  { %449 = vmatpush1.msra.mxu0 %v1185_v60  ;;  %564 = vmatprep.subr.mxu1 %v1070_v4 }
  0x4d   :  { %452 = vmatprep.subr.mxu0 %v1197_v2  ;;  %566 = vmatpush1.msra.mxu1 %v1072_v5 }
  0x4e   :  { %455 = vmatpush1.msra.mxu0 %v1208_v13  ;;  %568 = vmatprep.subr.mxu1 %v1074_v6 }
  0x4f   :  { %458 = vmatprep.subr.mxu0 %v1219_v44  ;;  %570 = vmatpush1.msra.mxu1 %v1076_v10 }
  0x50   :  { %461 = vmatpush1.msra.mxu0 %v1231_v53  ;;  %572 = vmatprep.subr.mxu1 %v1078_v11 }
  0x51   :  { %464 = vmatprep.subr.mxu0 %v1245_v59  ;;  %574 = vmatpush1.msra.mxu1 %v1080_v12 }
  0x52   :  { %467 = vmatpush1.msra.mxu0 %v1257_v43  ;;  %576 = vmatprep.subr.mxu1 %v1083_v16 }
  0x53   :  { %470 = vmatprep.subr.mxu0 %v1278_v58  ;;  %578 = vmatpush1.msra.mxu1 %v1085_v17 }
  0x54   :  { %473 = vmatpush1.msra.mxu0 %v1291_v8  ;;  %580 = vmatprep.subr.mxu1 %v1087_v18 }
  0x55   :  { %476 = vmatprep.subr.mxu0 %v1309_v50  ;;  %582 = vmatpush1.msra.mxu1 %v1100_v23 }
  0x56   :  { %479 = vmatpush1.msra.mxu0 %v1322_v63  ;;  %584 = vmatprep.subr.mxu1 %v1106_v25 }
  0x57   :  { %482 = vmatprep.subr.mxu0 %v1334_v61  ;;  %586 = vmatpush1.msra.mxu1 %v1764_v52 }
  0x58   :  { %485 = vmatpush1.msra.mxu0 %v1345_v28  ;;  %588 = vmatprep.subr.mxu1 %v1765_v21 }
  0x59   :  { %488 = vmatprep.subr.mxu0 %v1359_v3  ;;  %590 = vmatpush1.msra.mxu1 %v1766_v57 }
  0x5a   :  { %491 = vmatpush1.msra.mxu0 %v1371_v51  ;;  %592 = vmatprep.subr.mxu1 %v1767_v39 }
  0x5b   :  { %494 = vmatprep.subr.mxu0 %v1390_v0  ;;  %594 = vmatpush1.msra.mxu1 %v1768_v40 }
  0x5c   :  { %497 = vmatpush1.msra.mxu0 %v1401_v15  ;;  %596 = vmatprep.subr.mxu1 %v1769_v45 }
  0x5d   :  { %500 = vmatprep.subr.mxu0 %v1410_v62  ;;  %598 = vmatpush1.msra.mxu1 %v1770_v47 }
  0x5e   :  { %503 = vmatpush1.msra.mxu0 %v1418_v22  ;;  %600 = vmatprep.subr.mxu1 %v1771_v34 }
  0x5f   :  { %506 = vmatprep.subr.mxu0 %v1427_v48  ;;  %602 = vmatpush1.msra.mxu1 %v1772_v29 }
  0x60   :  { %509 = vmatpush1.msra.mxu0 %v1439_v7  ;;  %604 = vmatprep.subr.mxu1 %v1773_v35 }
  0x61   :  { %512 = vmatprep.subr.mxu0 %v1448_v33  ;;  %606 = vmatpush1.msra.mxu1 %v1774_v49  ;;  %v1778_v49 = vand.u32 4294901760, %v1103_v24  ;;  %v1785_v24 = vand.u32 4294901760, %v1145_v41  ;;  %v1790_v41 = vand.u32 4294901760, %v1208_v13  ;;  %v1807_v13 = vand.u32 4294901760, %v1427_v48 }
  0x62   :  { %515 = vmatpush1.msra.mxu0 %v1461_v55  ;;  %608 = vmatprep.subr.mxu1 %v1775_v9  ;;  %v1779_v55 = vld [vmem:[#allocation25_spill] sm:$0xff]  ;;  %v1780_v9 = vand.u32 4294901760, %v1109_v26  ;;  %v1786_v26 = vand.u32 4294901760, %v1159_v46  ;;  %v1791_v46 = vand.u32 4294901760, %v1219_v44  ;;  %v1809_v44 = vand.u32 4294901760, %v1448_v33 }
  0x63   :  { %518 = vmatprep.subr.mxu0 %v1471_v56  ;;  %610 = vmatpush1.msra.mxu1 %v1287_v1  ;;  %v1781_v1 = vld [vmem:[#allocation26_spill] sm:$0xff] }
  0x64   :  { %521 = vmatpush1.msra.mxu0 %v1479_v54  ;;  %612 = vmatprep.subr.mxu1 %v1301_v20  ;;  %v1782_v54 = vand.u32 4294901760, %v1123_v32  ;;  %v1787_v32 = vand.u32 4294901760, %v1185_v60  ;;  %v1792_v60 = vand.u32 4294901760, %v1231_v53  ;;  %v1810_v53 = vld [vmem:[#allocation29_spill] sm:$0xff] }
  0x65   :  { %557 = vmatmul.mubr.f32.vlgmr.msra.gmra.mxu0 %v1434_v14  ;;  %672 = vmatprep.subr.mxu0 %v1776_v30  ;;  %v1784_v30 = vld [vmem:[#allocation27_spill] sm:$0xff] }
  0x66   :  { %614 = vmatpush1.msra.mxu1 %v1777_v37  ;;  %676 = vmatpush1.msra.mxu0 %v1778_v49 }
  0x67   :  { %616 = vmatprep.subr.mxu1 %v1779_v55  ;;  %680 = vmatprep.subr.mxu0 %v1780_v9 }
  0x68   :  { %618 = vmatpush1.msra.mxu1 %v1781_v1  ;;  %684 = vmatpush1.msra.mxu0 %v1782_v54  ;;  %v1789_v54 = vand.u32 4294901760, %v1197_v2  ;;  %v1793_v2 = vand.u32 4294901760, %v1245_v59  ;;  %v1812_v59 = vld [vmem:[#allocation21_spill] sm:$0xff] }
  0x69   :  { %620 = vmatprep.subr.mxu1 %v1348_v27  ;;  %688 = vmatprep.subr.mxu0 %v1783_v19 }
  0x6a   :  { %622 = vmatpush1.msra.mxu1 %v1784_v30  ;;  %692 = vmatpush1.msra.mxu0 %v1785_v24 }
  0x6b   :  { %624 = vmatprep.subr.mxu1 %v1381_v42  ;;  %696 = vmatprep.subr.mxu0 %v1786_v26 }
  0x6c   :  { %626 = vmatpush1.msra.mxu1 %v1397_v31  ;;  %659 = vmatprep.mubr.f32.mxu1 %v1763_v38 }
  0x6d   :  { %700 = vmatpush1.msra.mxu0 %v1787_v32  ;;  %663 = vmatmul.mubr.f32.vlgmr.msra.gmra.mxu1 %v1788_v36 }
  0x6e   :  { %704 = vmatprep.subr.mxu0 %v1789_v54  ;;  %838 = vmatprep.subr.mxu1 %v1070_v4  ;;  %v1794_v4 = vand.u32 4294901760, %v1257_v43  ;;  %v1808_v43 = vand.u32 4294901760, %v1439_v7  ;;  %v74_v7 = vld [vmem:[%s1669_s2] sm:$0x3]  ;;  %s1041_s2 = smov [#allocation7]  }
  0x6f   :  { %708 = vmatpush1.msra.mxu0 %v1790_v41  ;;  %840 = vmatpush1.msra.mxu1 %v1072_v5  ;;  %v1795_v5 = vand.u32 4294901760, %v1278_v58  ;;  %v1811_v58 = vand.u32 4294901760, %v1810_v53  ;;  %s954_s24 = sshll.u32 %s1041_s2, 4  ;;  %s955_s24 = int_to_ptr.vmem [resolvable:$true] %s954_s24 }
  0x70   :  { %712 = vmatprep.subr.mxu0 %v1791_v46  ;;  %842 = vmatprep.subr.mxu1 %v1074_v6  ;;  %v1796_v6 = vand.u32 4294901760, %v1291_v8  ;;  %v1813_v8 = vand.u32 4294901760, %v1471_v56  ;;  %s1010_s25 = scalar_lea.vmem %s955_s24, 128  ;;  %p1015_p11 = scmp.lt.s32.totalorder %s955_s24, %s955_s24 }
  0x71   :  { %716 = vmatpush1.msra.mxu0 %v1792_v60  ;;  %844 = vmatpush1.msra.mxu1 %v1076_v10  ;;  %v1797_v10 = vand.u32 4294901760, %v1309_v50  ;;  %v1815_v50 = vld [vmem:[#allocation30_spill] sm:$0xff]  ;;  %p1011_p10 = scmp.ne.s32.totalorder %s955_s24, %s1010_s25  ;;  %p1016_p12 = scmp.lt.s32.totalorder %s1010_s25, %s1010_s25 }
  0x72   :  { %720 = vmatprep.subr.mxu0 %v1793_v2  ;;  %846 = vmatprep.subr.mxu1 %v1078_v11  ;;  %v1798_v11 = vand.u32 4294901760, %v1322_v63  ;;  %v1816_v63 = vand.u32 4294901760, %v1815_v50 }
  0x73   :  { %724 = vmatpush1.msra.mxu0 %v1794_v4  ;;  %848 = vmatpush1.msra.mxu1 %v1080_v12  ;;  %v1799_v12 = vand.u32 4294901760, %v1334_v61  ;;  %v1805_v61 = vand.u32 4294901760, %v1410_v62  ;;  %v1818_v62 = vld [vmem:[#allocation28_spill] sm:$0xff]  ;;  %p1017_p13 = por %p1016_p12, %p1015_p11 }
  0x74   :  { %728 = vmatprep.subr.mxu0 %v1795_v5  ;;  %850 = vmatprep.subr.mxu1 %v1083_v16  ;;  %v1800_v16 = vand.u32 4294901760, %v1345_v28  ;;  %v1814_v28 = vld [vmem:[#allocation22_spill] sm:$0xff] }
  0x75   :  { %732 = vmatpush1.msra.mxu0 %v1796_v6  ;;  %852 = vmatpush1.msra.mxu1 %v1085_v17  ;;  %v1801_v17 = vand.u32 4294901760, %v1359_v3  ;;  %v1806_v3 = vand.u32 4294901760, %v1418_v22  ;;  %p1018_p0 = pnand %p1017_p13, %p1011_p10 }
  0x76   :  { %736 = vmatprep.subr.mxu0 %v1797_v10  ;;  %854 = vmatprep.subr.mxu1 %v1087_v18  ;;  %v1802_v18 = vand.u32 4294901760, %v1371_v51  ;;  %v1817_v51 = vld [vmem:[#allocation23_spill] sm:$0xff] }
  0x77   :  { %740 = vmatpush1.msra.mxu0 %v1798_v11  ;;  %856 = vmatpush1.msra.mxu1 %v1100_v23  ;;  %v1803_v23 = vand.u32 4294901760, %v1390_v0  ;;  %v76_v0 = vlaneseq }
  0x78   :  { %744 = vmatprep.subr.mxu0 %v1799_v12  ;;  %858 = vmatprep.subr.mxu1 %v1106_v25  ;;  %v1804_v25 = vand.u32 4294901760, %v1401_v15 }
  0x79   :  { %748 = vmatpush1.msra.mxu0 %v1800_v16  ;;  %860 = vmatpush1.msra.mxu1 %v1764_v52 }
  0x7a   :  { %752 = vmatprep.subr.mxu0 %v1801_v17  ;;  %862 = vmatprep.subr.mxu1 %v1765_v21 }
  0x7b   :  { %756 = vmatpush1.msra.mxu0 %v1802_v18  ;;  %864 = vmatpush1.msra.mxu1 %v1766_v57 }
  0x7c   :  { %760 = vmatprep.subr.mxu0 %v1803_v23  ;;  %866 = vmatprep.subr.mxu1 %v1767_v39 }
  0x7d   :  { %764 = vmatpush1.msra.mxu0 %v1804_v25  ;;  %868 = vmatpush1.msra.mxu1 %v1768_v40 }
  0x7e   :  { %768 = vmatprep.subr.mxu0 %v1805_v61  ;;  %870 = vmatprep.subr.mxu1 %v1769_v45 }
  0x7f   :  { %772 = vmatpush1.msra.mxu0 %v1806_v3  ;;  %872 = vmatpush1.msra.mxu1 %v1770_v47 }
  0x80   :  { %776 = vmatprep.subr.mxu0 %v1807_v13  ;;  %874 = vmatprep.subr.mxu1 %v1771_v34 }
  0x81   :  { %780 = vmatpush1.msra.mxu0 %v1808_v43  ;;  %876 = vmatpush1.msra.mxu1 %v1772_v29 }
  0x82   :  { %784 = vmatprep.subr.mxu0 %v1809_v44  ;;  %878 = vmatprep.subr.mxu1 %v1773_v35 }
  0x83   :  { %788 = vmatpush1.msra.mxu0 %v1811_v58  ;;  %880 = vmatpush1.msra.mxu1 %v1812_v59 }
  0x84   :  { %792 = vmatprep.subr.mxu0 %v1813_v8  ;;  %882 = vmatprep.subr.mxu1 %v1814_v28 }
  0x85   :  { %796 = vmatpush1.msra.mxu0 %v1816_v63  ;;  %829 = vmatprep.mubr.f32.mxu0 %v1763_v38 }
  0x86   :  { %884 = vmatpush1.msra.mxu1 %v1817_v51  ;;  %831 = vmatmul.mubr.f32.vlgmr.msra.gmra.mxu0 %v1818_v62 }
  0x87   :  { %886 = vmatprep.subr.mxu1 %v1301_v20  ;;  %933 = vmatprep.mubr.f32.mxu1 %v1763_v38  ;;  %v77_v20 = vshrl.u32 %v76_v0, 7 }
  0x88   :  { %888 = vmatpush1.msra.mxu1 %v1777_v37 }
  0x89   :  { %890 = vmatprep.subr.mxu1 %v1779_v55  ;;  %v78_v15 = vsub.s32 0, %v77_v20  ;;  %v82_v22 = vsub.s32 1, %v77_v20 }
  0x8a   :  { %892 = vmatpush1.msra.mxu1 %v1781_v1 }
  0x8b   :  { %894 = vmatprep.subr.mxu1 %v1348_v27  ;;  %v79_v1 = vrot.slane %v74_v7, %v78_v15  ;;  %v83_v14 = vrot.slane %v74_v7, %v82_v22 }
  0x8c   :  { %896 = vmatpush1.msra.mxu1 %v1784_v30 }
  0x8d   :  { %898 = vmatprep.subr.mxu1 %v1381_v42 }
  0x8e   :  { %900 = vmatpush1.msra.mxu1 %v1397_v31 }
  0x8f   :  { %935 = vmatmul.mubr.f32.vlgmr.msra.gmra.mxu1 %v1818_v62 }
 0x105   :  { %v189_v37 = vpop.f32.mrf.mxu0 }
 0x106   :  { %v190_v49 = vadd.f32 %v189_v37, %v79_v1 }
 0x107   :  { %v191_v48 = vpop.f32.mrf.mxu0 }
 0x108   :  { %v192_v55 = vadd.f32 %v191_v48, %v83_v14 }
 0x10b   :  { %v421_v27 = vpop.f32.mrf.mxu1 }
 0x10c   :  { %v422_v9 = vadd.f32 %v421_v27, %v190_v49 }
 0x10d   :  { %v423_v42 = vpop.f32.mrf.mxu1 }
 0x10e   :  { %v424_v38 = vadd.f32 %v423_v42, %v192_v55 }
 0x125   :  { %v558_v33 = vpop.f32.mrf.mxu0 }
 0x126   :  { %v559_v52 = vadd.f32 %v558_v33, %v422_v9 }
 0x127   :  { %v560_v31 = vpop.f32.mrf.mxu0 }
 0x128   :  { %v561_v57 = vadd.f32 %v560_v31, %v424_v38 }
 0x12d   :  { %v664_v56 = vpop.f32.mrf.mxu1 }
 0x12e   :  { %v665_v39 = vadd.f32 %v664_v56, %v559_v52 }
 0x12f   :  { %v666_v21 = vpop.f32.mrf.mxu1 }
 0x130   :  { %v667_v45 = vadd.f32 %v666_v21, %v561_v57 }
 0x146   :  { %v832_v35 = vpop.f32.mrf.mxu0 }
 0x147   :  { %v833_v47 = vadd.f32 %v832_v35, %v665_v39 }
 0x148   :  { %v834_v40 = vpop.f32.mrf.mxu0 }
 0x149   :  { %v835_v29 = vadd.f32 %v834_v40, %v667_v45 }
 0x14f   :  { %v936_v34 = vpop.f32.mrf.mxu1 }
 0x150   :  { %v937_v19 = vadd.f32 %v936_v34, %v833_v47 }
 0x151   :  { %v938_v30 = vpop.f32.mrf.mxu1 }
 0x152   :  { %v939_v24 = vadd.f32 %v938_v30, %v835_v29  ;;  %v941_v26 = vmax.f32 %v937_v19, 0.0 }
 0x154   :  { %v942_v32 = vmax.f32 %v939_v24, 0.0 }
 0x156   :  { %v945_v36 = vcombine.low %v941_v26, %v942_v32 }
 0x158   :  { %947 = vst [vmem:[#allocation7] sm:$0xff] %v945_v36 }
 0x159   :  { %1021 = shalt.err (!%p1018_p0)
}
 0x15a   :  { %957 = dma.vmem_to_hbm [thread:$0]  %s955_s24, 128, %s1670_s3, [#allocation4]  }
 0x15b   :  { %1034 = dma.done.wait [#allocation4], 128  }
 0x15c   :  { %1035 = vsyncadd [#allocation4], 4294967168 }
 0x15d   :  { %961 = vsyncpa [#allocation3], 1 }
 0x15e   :  { %962 = vsyncpa [#allocation6], 1 }
 0x15f   :  { %963 = vsyncpa [#allocation4], 1 }

</bundles_post_ra>
